<compile_context>
chip_gen: v5e
topology: v5e:2x2
jax: 0.10.0
libtpu: 0.0.40
codegen_flags: <defaults>
</compile_context>

<pallas_src>
import functools

import jax
import jax.numpy as jnp
import numpy as np
from jax.experimental import pallas as pl
from jax.experimental.pallas import tpu as pltpu


def _scatter_kernel(num_edges, tiles_per_slab, tile_e,
                    et_ref, c_ref, sums_ref, counts_ref):
    """One edge-tile step of the per-relation segment sum.

    et_ref     : [1, tile_e] int32 edge types (padded entries are -1).
    c_ref      : [tile_e, 3*in] f32 edge features (native lane width).
    sums_ref   : [R, 3*in]  f32 per-relation sums for this slab (resident).
    counts_ref : [R, 1]     f32 per-relation edge counts for this slab.
    """
    e = pl.program_id(1)

    # --- init this slab's resident accumulators on its first edge tile ---
    @pl.when(e == 0)
    def _init():
        sums_ref[...] = jnp.zeros_like(sums_ref)
        counts_ref[...] = jnp.zeros_like(counts_ref)

    num_rel = sums_ref.shape[0]
    et = et_ref[...]                                             # [1, tile_e]
    rel_ids = jax.lax.broadcasted_iota(jnp.int32, (num_rel, tile_e), 0)
    onehot = (rel_ids == et).astype(jnp.float32)                 # [R, tile_e]

    # Zero rows beyond E (last partial / redundant slab-tail tile) so stale
    # VMEM can never reach the accumulator through 0 * NaN in the MXU.
    tile_idx = pl.program_id(0) * tiles_per_slab + e
    rows = tile_idx * tile_e + jax.lax.broadcasted_iota(
        jnp.int32, (tile_e, 1), 0)
    c_tile = jnp.where(rows < num_edges, c_ref[...], 0.0)

    # Scatter-add this edge tile: onehot [R, tile_e] @ c_tile [tile_e, 3*in].
    sums_ref[...] += jnp.dot(onehot, c_tile,
                             preferred_element_type=jnp.float32)
    # XLU lane-reduce; exact integers in f32 (good to 2^24 edges/relation).
    counts_ref[...] += jnp.sum(onehot, axis=1, keepdims=True)


def _epilogue_kernel(sums_ref, counts_ref, g_init_ref, wg_ref, wrel_ref,
                     brel_ref, out_ref):
    """Combine slabs, divide by counts, apply Wg, Wrel and bias (all tiny)."""
    sums = jnp.sum(sums_ref[...], axis=0)            # [R, 3*in]
    counts = jnp.sum(counts_ref[...], axis=0)        # [R, 1], exact integers
    means = sums / jnp.maximum(counts, 1.0)          # scatter_mean (empty -> 0)
    g_mean = jnp.dot(means, wg_ref[...], preferred_element_type=jnp.float32)
    rel = jnp.dot(g_init_ref[...], wrel_ref[...],
                  preferred_element_type=jnp.float32) + brel_ref[...]
    out_ref[...] = (rel + g_mean).astype(out_ref.dtype)


def relation_layer(g_initial, c_ijk, edge_type, wg_t, wrel_t, brel, *,
                   tile_e=8192, num_slabs=2):
    """g_initial [R, in], c_ijk [E, 3*in], edge_type [E] int, wg_t [3*in, out],
    wrel_t [in, out], brel [1, out]  ->  g_prime [R, out] float32."""
    R, in_size = g_initial.shape
    E, c3 = c_ijk.shape
    out_size = wrel_t.shape[1]
    f32 = jnp.float32

    # Edge tile: multiple of 128 (edge_type / onehot lane dim), no larger than
    # E so the c BlockSpec never exceeds the array.  Large tiles amortise the
    # per-grid-step overhead; even 8192 rows is only ~3 MiB per c buffer.
    tile_e = max(128, (min(int(tile_e), E) // 128) * 128)

    c_f32 = c_ijk.astype(f32)
    if E < tile_e:                       # only when E < 128: negligible pad
        c_f32 = jnp.pad(c_f32, ((0, tile_e - E), (0, 0)))

    num_tiles = pl.cdiv(E, tile_e)
    num_slabs = max(1, int(num_slabs))
    tiles_per_slab = pl.cdiv(num_tiles, num_slabs)
    max_tile = num_tiles - 1

    # edge_type is tiny (4 B/edge): pad so every grid step reads in-bounds;
    # padded entries (-1) never match a relation row.
    et_len = num_slabs * tiles_per_slab * tile_e
    et_p = jnp.full((1, et_len), -1, jnp.int32)
    et_p = et_p.at[0, :E].set(edge_type.astype(jnp.int32))

    kernel = functools.partial(_scatter_kernel, E, tiles_per_slab, tile_e)
    part_sums, part_counts = pl.pallas_call(
        kernel,
        out_shape=(
            jax.ShapeDtypeStruct((num_slabs, R, c3), f32),
            jax.ShapeDtypeStruct((num_slabs, R, 1), f32),
        ),
        grid_spec=pltpu.PrefetchScalarGridSpec(
            num_scalar_prefetch=0,
            grid=(num_slabs, tiles_per_slab),
            in_specs=[
                # edge-type tile (tiny, pipelined alongside c)
                pl.BlockSpec((1, tile_e),
                             lambda s, e: (0, s * tiles_per_slab + e)),
                # c_ijk tile at native lane width (the only E-sized stream);
                # clamp so redundant slab-tail tiles never DMA out of bounds
                # (their contribution is masked to zero in-kernel anyway).
                # If profiling ever shows exposed DMA, add
                # pipeline_mode=pl.Buffered(3) here.
                pl.BlockSpec((tile_e, c3),
                             lambda s, e: (jnp.minimum(
                                 s * tiles_per_slab + e, max_tile), 0)),
            ],
            out_specs=(
                pl.BlockSpec((None, R, c3), lambda s, e: (s, 0, 0)),
                pl.BlockSpec((None, R, 1), lambda s, e: (s, 0, 0)),
            ),
        ),
        compiler_params=pltpu.CompilerParams(
            # leading axis: independent slabs -> sharded across TensorCores on
            # v7x, serialised at negligible cost on 1-TC v5e/v6e;
            # trailing axis: reduction over edge tiles (resident accumulator).
            dimension_semantics=("parallel", "arbitrary"),
            vmem_limit_bytes=32 * 1024 * 1024,
        ),
    )(et_p, c_f32)

    # Tiny epilogue kernel: R x (3*in / out) work only, everything resident.
    # TODO(synk): if R ever reaches the hundreds/thousands, replace the onehot
    # scatter above with edges pre-grouped by relation + scalar-prefetch group
    # offsets to keep the kernel mem-bound instead of MXU-bound.
    out = pl.pallas_call(
        _epilogue_kernel,
        out_shape=jax.ShapeDtypeStruct((R, out_size), f32),
    )(part_sums, part_counts,
      g_initial.astype(f32), wg_t.astype(f32), wrel_t.astype(f32),
      brel.astype(f32))
    return out


def xavier_normal(key, shape, gain):
    fan_out, fan_in = shape      # torch Linear weight is [out, in]
    std = gain * np.sqrt(2.0 / (fan_in + fan_out))
    return jax.random.normal(key, shape, dtype=jnp.float32) * std


if __name__ == "__main__":
    in_size, out_size = 32, 32
    num_rel = 8        # R: number of relation types (rows of g_initial)
    num_edges = 200    # E: number of triples / edges

    key = jax.random.PRNGKey(0)
    k_wrel, k_wg, k_gi, k_c, k_et = jax.random.split(key, 5)

    # Parameters (matching __init__ shapes / init_params of the torch module)
    w_rel = xavier_normal(k_wrel, (out_size, in_size), gain=1.414)    # [out, in]
    w_g = xavier_normal(k_wg, (out_size, in_size * 3), gain=1.414)    # [out, 3*in]
    b_rel = jnp.zeros((1, out_size), dtype=jnp.float32)

    # Inputs
    g_initial = jax.random.normal(k_gi, (num_rel, in_size), dtype=jnp.float32)
    c_ijk = jax.random.normal(k_c, (num_edges, in_size * 3), dtype=jnp.float32)
    edge_type = jax.random.randint(k_et, (num_edges,), 0, num_rel, dtype=jnp.int32)
    # make sure every relation type appears at least once (so dim_size == num_rel)
    edge_type = edge_type.at[:num_rel].set(jnp.arange(num_rel, dtype=jnp.int32))

    out = relation_layer(g_initial, c_ijk, edge_type, w_g.T, w_rel.T, b_rel)
    out = jax.block_until_ready(out)

    # Pure-JAX f32 reference (matches the torch forward)
    gw_ref = c_ijk @ w_g.T
    onehot = (edge_type[None, :] == jnp.arange(num_rel)[:, None]).astype(jnp.float32)
    sums = onehot @ gw_ref
    counts = jnp.maximum(onehot.sum(axis=1, keepdims=True), 1.0)
    g_mean = sums / counts
    ref = g_initial @ w_rel.T + b_rel + g_mean

    np.testing.assert_allclose(np.asarray(out), np.asarray(ref),
                               rtol=1e-4, atol=1e-4)
    print("KERNEL_OK")
</pallas_src>

<mosaic_0001>
module attributes {stable_mosaic.version = 11 : i64} {
  func.func @_scatter_kernel(%arg0: i32, %arg1: i32, %arg2: memref<1x128xi32, #tpu.memory_space<vmem>>, %arg3: memref<128x96xf32, #tpu.memory_space<vmem>>, %arg4: memref<1x8x96xf32, #tpu.memory_space<vmem>>, %arg5: memref<1x8x1xf32, #tpu.memory_space<vmem>>) attributes {dimension_semantics = [#tpu.dimension_semantics<parallel>, #tpu.dimension_semantics<arbitrary>], iteration_bounds = array<i64: 2, 1>, scalar_prefetch = 0 : i64, scratch_operands = 0 : i64, tpu.core_type = #tpu.core_type<tc>, window_params = [{transform_indices = @transform_0, window_bounds = array<i64: 1, 128>}, {transform_indices = @transform_1, window_bounds = array<i64: 128, 96>}, {transform_indices = @transform_2, window_bounds = array<i64: 1, 8, 96>}, {transform_indices = @transform_3, window_bounds = array<i64: 1, 8, 1>}]} {
    %c0_i32 = arith.constant 0 : i32
    %0 = arith.cmpi eq, %arg1, %c0_i32 : i32
    %1 = arith.extui %0 : i1 to i32
    %c0_i32_0 = arith.constant 0 : i32
    %2 = arith.cmpi ne, %1, %c0_i32_0 : i32
    scf.if %2 {
      %cst_18 = arith.constant 0.000000e+00 : f32
      %37 = vector.broadcast %cst_18 : f32 to vector<8x96xf32>
      %c0_19 = arith.constant 0 : index
      %c0_20 = arith.constant 0 : index
      %c0_21 = arith.constant 0 : index
      %38 = vector.load %arg4[%c0_19, %c0_20, %c0_21] : memref<1x8x96xf32, #tpu.memory_space<vmem>>, vector<1x8x96xf32>
      %39 = vector.shape_cast %38 : vector<1x8x96xf32> to vector<8x96xf32>
      %40 = vector.shape_cast %37 : vector<8x96xf32> to vector<1x8x96xf32>
      tpu.vector_store %arg4[%c0_19, %c0_20, %c0_21], %40 {strides = array<i32>} : memref<1x8x96xf32, #tpu.memory_space<vmem>>, vector<1x8x96xf32>,
      %cst_22 = arith.constant 0.000000e+00 : f32
      %41 = vector.broadcast %cst_22 : f32 to vector<8x1xf32>
      %c0_23 = arith.constant 0 : index
      %c0_24 = arith.constant 0 : index
      %c0_25 = arith.constant 0 : index
      %42 = vector.load %arg5[%c0_23, %c0_24, %c0_25] : memref<1x8x1xf32, #tpu.memory_space<vmem>>, vector<1x8x1xf32>
      %43 = vector.shape_cast %42 : vector<1x8x1xf32> to vector<8x1xf32>
      %44 = vector.shape_cast %41 : vector<8x1xf32> to vector<1x8x1xf32>
      tpu.vector_store %arg5[%c0_23, %c0_24, %c0_25], %44 {strides = array<i32>} : memref<1x8x1xf32, #tpu.memory_space<vmem>>, vector<1x8x1xf32>,
    } else {
    }
    %c0 = arith.constant 0 : index
    %c0_1 = arith.constant 0 : index
    %3 = vector.load %arg2[%c0, %c0_1] : memref<1x128xi32, #tpu.memory_space<vmem>>, vector<1x128xi32>
    %4 = tpu.iota {dimensions = array<i32: 0>} : vector<8x128xi32>
    %5 = vector.broadcast %3 : vector<1x128xi32> to vector<8x128xi32>
    %6 = arith.cmpi eq, %4, %5 : vector<8x128xi32>
    %7 = arith.extui %6 : vector<8x128xi1> to vector<8x128xi32>
    %8 = arith.sitofp %7 : vector<8x128xi32> to vector<8x128xf32>
    %c1_i32 = arith.constant 1 : i32
    %9 = arith.muli %arg0, %c1_i32 : i32
    %10 = arith.addi %9, %arg1 : i32
    %c128_i32 = arith.constant 128 : i32
    %11 = arith.muli %10, %c128_i32 : i32
    %12 = tpu.iota {dimensions = array<i32: 0>} : vector<128x1xi32>
    %13 = vector.broadcast %11 : i32 to vector<128x1xi32>
    %14 = arith.addi %13, %12 : vector<128x1xi32>
    %c200_i32 = arith.constant 200 : i32
    %15 = vector.broadcast %c200_i32 : i32 to vector<128x1xi32>
    %16 = arith.cmpi slt, %14, %15 : vector<128x1xi32>
    %c0_2 = arith.constant 0 : index
    %c0_3 = arith.constant 0 : index
    %17 = vector.load %arg3[%c0_2, %c0_3] : memref<128x96xf32, #tpu.memory_space<vmem>>, vector<128x96xf32>
    %cst = arith.constant 0.000000e+00 : f32
    %18 = vector.shape_cast %16 : vector<128x1xi1> to vector<128x1xi1>
    %19 = vector.broadcast %18 : vector<128x1xi1> to vector<128x96xi1>
    %20 = vector.broadcast %cst : f32 to vector<128x96xf32>
    %21 = arith.select %19, %17, %20 : vector<128x96xi1>, vector<128x96xf32>
    %c0_4 = arith.constant 0 : index
    %c0_5 = arith.constant 0 : index
    %c0_6 = arith.constant 0 : index
    %22 = vector.load %arg4[%c0_4, %c0_5, %c0_6] : memref<1x8x96xf32, #tpu.memory_space<vmem>>, vector<1x8x96xf32>
    %23 = vector.shape_cast %22 : vector<1x8x96xf32> to vector<8x96xf32>
    %cst_7 = arith.constant dense<0.000000e+00> : vector<8x96xf32>
    %24 = tpu.matmul %8, %21, %cst_7 {dimension_numbers = #tpu.dot_dimension_numbers<[1], [0], [0], [1], [0, 0, 1, 1], [], []>} : vector<8x128xf32>, vector<128x96xf32>, vector<8x96xf32> -> vector<8x96xf32>
    %25 = arith.addf %23, %24 : vector<8x96xf32>
    %c0_8 = arith.constant 0 : index
    %c0_9 = arith.constant 0 : index
    %c0_10 = arith.constant 0 : index
    %26 = vector.load %arg4[%c0_8, %c0_9, %c0_10] : memref<1x8x96xf32, #tpu.memory_space<vmem>>, vector<1x8x96xf32>
    %27 = vector.shape_cast %26 : vector<1x8x96xf32> to vector<8x96xf32>
    %28 = vector.shape_cast %25 : vector<8x96xf32> to vector<1x8x96xf32>
    tpu.vector_store %arg4[%c0_8, %c0_9, %c0_10], %28 {strides = array<i32>} : memref<1x8x96xf32, #tpu.memory_space<vmem>>, vector<1x8x96xf32>,
    %c0_11 = arith.constant 0 : index
    %c0_12 = arith.constant 0 : index
    %c0_13 = arith.constant 0 : index
    %29 = vector.load %arg5[%c0_11, %c0_12, %c0_13] : memref<1x8x1xf32, #tpu.memory_space<vmem>>, vector<1x8x1xf32>
    %30 = vector.shape_cast %29 : vector<1x8x1xf32> to vector<8x1xf32>
    %cst_14 = arith.constant dense<0.000000e+00> : vector<8xf32>
    %31 = vector.multi_reduction <add>, %8, %cst_14 [1] : vector<8x128xf32> to vector<8xf32>
    %32 = vector.shape_cast %31 : vector<8xf32> to vector<8x1xf32>
    %33 = arith.addf %30, %32 : vector<8x1xf32>
    %c0_15 = arith.constant 0 : index
    %c0_16 = arith.constant 0 : index
    %c0_17 = arith.constant 0 : index
    %34 = vector.load %arg5[%c0_15, %c0_16, %c0_17] : memref<1x8x1xf32, #tpu.memory_space<vmem>>, vector<1x8x1xf32>
    %35 = vector.shape_cast %34 : vector<1x8x1xf32> to vector<8x1xf32>
    %36 = vector.shape_cast %33 : vector<8x1xf32> to vector<1x8x1xf32>
    tpu.vector_store %arg5[%c0_15, %c0_16, %c0_17], %36 {strides = array<i32>} : memref<1x8x1xf32, #tpu.memory_space<vmem>>, vector<1x8x1xf32>,
    return
  }
  func.func @transform_0(%arg0: i32, %arg1: i32) -> (i32, i32) {
    %c1_i32 = arith.constant 1 : i32
    %0 = arith.muli %arg0, %c1_i32 : i32
    %1 = arith.addi %0, %arg1 : i32
    %c0_i32 = arith.constant 0 : i32
    %c0_i32_0 = arith.constant 0 : i32
    return %c0_i32, %1 : i32, i32
  }
  func.func @transform_1(%arg0: i32, %arg1: i32) -> (i32, i32) {
    %c1_i32 = arith.constant 1 : i32
    %0 = arith.muli %arg0, %c1_i32 : i32
    %1 = arith.addi %0, %arg1 : i32
    %c1_i32_0 = arith.constant 1 : i32
    %2 = arith.minsi %1, %c1_i32_0 : i32
    %c0_i32 = arith.constant 0 : i32
    %c0_i32_1 = arith.constant 0 : i32
    return %2, %c0_i32 : i32, i32
  }
  func.func @transform_2(%arg0: i32, %arg1: i32) -> (i32, i32, i32) {
    %c0_i32 = arith.constant 0 : i32
    %c0_i32_0 = arith.constant 0 : i32
    %c0_i32_1 = arith.constant 0 : i32
    return %arg0, %c0_i32, %c0_i32_0 : i32, i32, i32
  }
  func.func @transform_3(%arg0: i32, %arg1: i32) -> (i32, i32, i32) {
    %c0_i32 = arith.constant 0 : i32
    %c0_i32_0 = arith.constant 0 : i32
    %c0_i32_1 = arith.constant 0 : i32
    return %arg0, %c0_i32, %c0_i32_0 : i32, i32, i32
  }
}

</mosaic_0001>

<bundles_post_ra>
// kernel: tpu_custom_call.1
= control target key start
LH: loop header
LB: loop body
LE: loop exit
PB: predicated region body
PF: predicated region fallthrough
CT: control target
= control target key end

     0   :  { %9 = vsyncpa [#allocation3], 0  ;;  %s915_s0 = inlined_call_operand.vmem [shape: s32[1,256], index: 0, kind: input, shape index: {}]   ;;  %s916_s1 = inlined_call_operand.vmem [shape: f32[200,96], index: 1, kind: input, shape index: {}]   ;;  %s917_s2 = inlined_call_operand.hbm [shape: f32[2,8,96], index: 2, kind: output, shape index: {0}]   ;;  %s918_s3 = inlined_call_operand.vmem [shape: f32[2,8,1], index: 3, kind: output, shape index: {1}]  }
   0x1   :  { %11 = vsyncpa [#allocation3 + $0x1], 0  ;;  %s730_s12 = smov 0   ;;  %s732_s13 = smov 0  }
   0x2   :  { %s734_s14 = smov 0   ;;  %s736_s15 = smov 0  }
   0x3   :  { %s738_s16 = smov 0   ;;  %s740_s17 = smov 0  }
   0x4 LB: > { %s538_s18 = sadd.s32 4294967295, %s706_s17   ;;  %s539_s19 = sadd.s32 4294967294, %s706_s17   ;;  %s706_s17 = sphi %s740_s17, %s17_s17   ;;  %s702_s16 = sphi %s738_s16, %s925_s16   ;;  %s698_s15 = sphi %s736_s15, %s924_s15   ;;  %s694_s14 = sphi %s734_s14, %s923_s14   ;;  %s690_s13 = sphi %s732_s13, %s922_s13   ;;  %s686_s12 = sphi %s730_s12, %s921_s12  }
   0x5   : > { %s29_s20 = sadd.s32 1, %s702_s16  ;;  %s96_s21 = sadd.s32 1, %s694_s14 }
   0x6   : > { %p31_p0 = scmp.ge.s32.totalorder %s29_s20, 2  ;;  %p106_p1 = scmp.ne.s32.totalorder %s694_s14, %s690_s13 }
   0x7   : > { %p107_p2 = scmp.eq.s32.totalorder %s538_s18, 1  ;;  %p112_p3 = scmp.ne.s32.totalorder %s690_s13, %s686_s12 }
   0x8   : > { %s927_s20 = smov (%p31_p0, %s29_s20), 0  ;;  %p113_p5 = scmp.eq.s32.totalorder %s539_s19, 1 }
   0x9   : > { %p770_p4 = por %p107_p2, %p106_p1  ;;  %s93_s23 = ssub.s32 %s702_s16, %s927_s20 }
   0xa   : > { %p542_p6 = scmp.ge.s32.totalorder %s706_s17, 1  ;;  %p94_p7 = scmp.eq.s32.totalorder %s93_s23, 0 }
   0xb   : > { %p777_p8 = por %p113_p5, %p112_p3  ;;  %p188_p9 = scmp.lt.s32.totalorder %s706_s17, 3 }
   0xc   : > { %s783_s25 = scalar_select %p94_p7, %s694_s14, %s96_s21  }
   0xd   : > { %p189_p10 = pnand %p542_p6, %p188_p9 }
   0xe   : > { %p228_p11 = scmp.lt.s32.totalorder (!%p189_p10), %s698_s15, 1  ;;  %s548_s26 = sshll.u32 (!%p189_p10), %s698_s15, 7 }
   0xf   : > { %192 = sbr.rel (%p189_p10) target bundleno = 191 (0xbf), region = 28  ;;  %s218_s5 = sand.u32 (!%p189_p10), 1, %s690_s13  }
  0x10   : > { %s543_s10 = sshll.u32 (!%p189_p10), %s218_s5, 3 }
  0x11   : > { %s832_s11 = scalar_lea.vmem (!%p189_p10), [#allocation2], %s543_s10  ;;  %s648_s10 = scalar_lea.hbm (!%p189_p10), %s917_s2, 16 }
  0x14   : > { %v265_v0 = vlaneseq  ;;  %s788_s27 = scalar_select %p228_p11, %s698_s15, 1  ;;  %v792_v2 = vstv %s548_s26  ;;  %vm260_vm5 = vcmask 785408   ;;  %v708_v25 = vmov 0.0  }
  0x15   : > { %261 = vst.msk [vmem:[%s832_s11] sm:$0xff] %vm260_vm5, %v708_v25  ;;  %v709_v53 = vmov 1.0   ;;  %s567_s26 = sshll.u32 %s698_s15, 3 }
  0x16   : > { %v790_v1 = vshrl.u32 %v265_v0, 7  ;;  %s544_s28 = sshll.u32 %s788_s27, 4  ;;  %s230_s4 = scalar_lea.vmem %s915_s0, %s788_s27 }
  0x17   : > { %p240_p12 = scmp.lt.s32.totalorder %s544_s28, 24  ;;  %v819_v15 = vld [vmem:[%s230_s4] ss:$0 sm:$0xff]  ;;  %s546_s18 = sshll.u32 %s788_s27, 3 }
  0x18   : > { %v287_v3 = vadd.s32 120, %v790_v1  ;;  %v286_v4 = vadd.s32 112, %v790_v1  ;;  %v285_v5 = vadd.s32 104, %v790_v1  ;;  %v284_v8 = vadd.s32 96, %v790_v1  ;;  %s255_s23 = scalar_lea.vmem %s918_s3, %s546_s18  ;;  %s430_s30 = scalar_lea.hbm %s917_s2, %s567_s26 }
  0x19   : > { %s929_s28 = smov (!%p240_p12, %s544_s28), 24  ;;  %v283_v10 = vadd.s32 88, %v790_v1  ;;  %v282_v14 = vadd.s32 80, %v790_v1  ;;  %v281_v18 = vadd.s32 72, %v790_v1  ;;  %v280_v21 = vadd.s32 64, %v790_v1  ;;  %s432_s27 = sshll.u32 %s832_s11, 4  ;;  %s433_s27 = int_to_ptr.vmem [resolvable:$true] %s432_s27 }
  0x1a   : > { %v304_v6 = vadd.s32 %v792_v2, %v287_v3  ;;  %v303_v7 = vadd.s32 %v792_v2, %v286_v4  ;;  %s545_s6 = sshll.u32 %s929_s28, 3  ;;  %v302_v9 = vadd.s32 %v792_v2, %v285_v5  ;;  %v301_v13 = vadd.s32 %v792_v2, %v284_v8  ;;  %s434_s4 = sshll.u32 %s430_s30, 4  ;;  %s435_s4 = int_to_ptr.hbm [resolvable:$true] %s434_s4 }
  0x1b   : > { %s811_s9 = scalar_lea.vmem %s916_s1, %s545_s6  ;;  %v300_v17 = vadd.s32 %v792_v2, %v283_v10  ;;  %v299_v20 = vadd.s32 %v792_v2, %v282_v14  ;;  %vm268_vm4 = vcmp.eq.s32.totalorder %v790_v1, %v819_v15  ;;  %v298_v23 = vadd.s32 %v792_v2, %v281_v18  ;;  %s416_s6 = scalar_lea.sflag [#allocation3], %s218_s5 }
  0x1c   : > { %vm320_vm0 = vcmp.lt.s32.totalorder %v304_v6, 200  ;;  %v336_v11 = vld [vmem:[%s811_s9 + $0x78] sm:$0xff]  ;;  %vm319_vm1 = vcmp.lt.s32.totalorder %v303_v7, 200  ;;  %v335_v12 = vld [vmem:[%s811_s9 + $0x70] sm:$0xff]  ;;  %vm318_vm2 = vcmp.lt.s32.totalorder %v302_v9, 200  ;;  %v334_v16 = vld [vmem:[%s811_s9 + $0x68] sm:$0xff]  ;;  %v297_v28 = vadd.s32 %v792_v2, %v280_v21 }
  0x1d   : > { %549 = vmatpush.msk.msra.mxu0 %vm320_vm0, %v336_v11  ;;  %vm317_vm3 = vcmp.lt.s32.totalorder %v301_v13, 200  ;;  %v333_v19 = vld [vmem:[%s811_s9 + $0x60] sm:$0xff]  ;;  %vm316_vm6 = vcmp.lt.s32.totalorder %v300_v17, 200  ;;  %v332_v22 = vld [vmem:[%s811_s9 + $0x58] sm:$0xff]  ;;  %v279_v24 = vadd.s32 56, %v790_v1  ;;  %v547_v26 = vsel %vm268_vm4, 1.0, %v708_v25 }
  0x1e   : > { %410 = vadd.xlane.f32.xlu0 %v547_v26  ;;  %vm315_vm7 = vcmp.lt.s32.totalorder %v299_v20, 200  ;;  %v331_v27 = vld [vmem:[%s811_s9 + $0x50] sm:$0xff]  ;;  %v278_v29 = vadd.s32 48, %v790_v1  ;;  %vm314_vm8 = vcmp.lt.s32.totalorder %v298_v23, 200  ;;  %v330_v30 = vld [vmem:[%s811_s9 + $0x48] sm:$0xff]  ;;  %v277_v32 = vadd.s32 40, %v790_v1 }
  0x1f   : > { %550 = vmatpush.msk.msra.mxu0 %vm319_vm1, %v335_v12  ;;  %v296_v31 = vadd.s32 %v792_v2, %v279_v24  ;;  %vm313_vm9 = vcmp.lt.s32.totalorder %v297_v28, 200  ;;  %v329_v33 = vld [vmem:[%s811_s9 + $0x40] sm:$0xff]  ;;  %v276_v35 = vadd.s32 32, %v790_v1  ;;  %v328_v36 = vld [vmem:[%s811_s9 + $0x38] sm:$0xff]  ;;  %v275_v38 = vadd.s32 24, %v790_v1  ;;  %v327_v39 = vld [vmem:[%s811_s9 + $0x30] sm:$0xff] }
  0x20   : > { %v295_v34 = vadd.s32 %v792_v2, %v278_v29  ;;  %v294_v37 = vadd.s32 %v792_v2, %v277_v32  ;;  %v274_v41 = vadd.s32 16, %v790_v1  ;;  %v326_v42 = vld [vmem:[%s811_s9 + $0x28] sm:$0xff]  ;;  %v273_v44 = vadd.s32 8, %v790_v1  ;;  %v325_v45 = vld [vmem:[%s811_s9 + $0x20] sm:$0xff]  ;;  %v324_v47 = vld [vmem:[%s811_s9 + $0x18] sm:$0xff]  ;;  %s642_s7 = sshra.s32 %s435_s4, 4  ;;  %s643_s7 = int_to_ptr.hbm [resolvable:$true] %s642_s7 }
  0x21   : > { %551 = vmatpush.msk.msra.mxu0 %vm318_vm2, %v334_v16  ;;  %vm312_vm10 = vcmp.lt.s32.totalorder %v296_v31, 200  ;;  %v293_v40 = vadd.s32 %v792_v2, %v276_v35  ;;  %v292_v43 = vadd.s32 %v792_v2, %v275_v38  ;;  %v323_v49 = vld [vmem:[%s811_s9 + $0x10] sm:$0xff]  ;;  %v289_v50 = vadd.s32 %v792_v2, %v790_v1  ;;  %v322_v51 = vld [vmem:[%s811_s9 + $0x8] sm:$0xff]  ;;  %v321_v52 = vld [vmem:[%s811_s9] sm:$0xff]  ;;  %s644_s8 = scalar_lea.hbm %s643_s7, 8  ;;  %p649_p2 = scmp.lt.s32.totalorder %s643_s7, %s917_s2 }
  0x22   : > { %vm311_vm11 = vcmp.lt.s32.totalorder %v295_v34, 200  ;;  %vm310_vm12 = vcmp.lt.s32.totalorder %v294_v37, 200  ;;  %v291_v46 = vadd.s32 %v792_v2, %v274_v41  ;;  %v290_v48 = vadd.s32 %v792_v2, %v273_v44  ;;  %v385_v57 = vld [vmem:[%s832_s11] sm:$0xff]  ;;  %p645_p13 = scmp.ne.s32.totalorder %s643_s7, %s644_s8  ;;  %p650_p3 = scmp.lt.s32.totalorder %s648_s10, %s644_s8 }
  0x23   : > { %552 = vmatpush.msk.msra.mxu0 %vm317_vm3, %v333_v19  ;;  %vm309_vm13 = vcmp.lt.s32.totalorder %v293_v40, 200  ;;  %vm308_vm14 = vcmp.lt.s32.totalorder %v292_v43, 200  ;;  %vm305_vm1 = vcmp.lt.s32.totalorder %v289_v50, 200  ;;  %vm262_vm2 = vcmask 7168  }
  0x24   : > { %vm307_vm15 = vcmp.lt.s32.totalorder %v291_v46, 200  ;;  %vm306_vm0 = vcmp.lt.s32.totalorder %v290_v48, 200  ;;  %263 = vst.msk [vmem:[%s255_s23] sm:$0xff] %vm262_vm2, %v708_v25  ;;  %p646_p0 = pnand %p645_p13, %p770_p4  ;;  %p651_p5 = por %p650_p3, %p649_p2 }
  0x25   : > { %553 = vmatpush.msk.msra.mxu0 %vm316_vm6, %v332_v22 }
  0x26   : > { %p647_p1 = pneg %p646_p0 }
  0x27   : > { %554 = vmatpush.msk.msra.mxu0 %vm315_vm7, %v331_v27 }
  0x28   : > { %p652_p6 = pnand %p651_p5, %p647_p1 }
  0x29   : > { %555 = vmatpush.msk.msra.mxu0 %vm314_vm8, %v330_v30 }
  0x2b   : > { %556 = vmatpush.msk.msra.mxu0 %vm313_vm9, %v329_v33  ;;  %v409_v54 = vld [vmem:[%s255_s23] sm:$0xff] }
  0x2d   : > { %557 = vmatpush.msk.msra.mxu0 %vm312_vm10, %v328_v36 }
  0x2f   : > { %558 = vmatpush.msk.msra.mxu0 %vm311_vm11, %v327_v39 }
  0x31   : > { %559 = vmatpush.msk.msra.mxu0 %vm310_vm12, %v326_v42 }
  0x33   : > { %560 = vmatpush.msk.msra.mxu0 %vm309_vm13, %v325_v45 }
  0x35   : > { %561 = vmatpush.msk.msra.mxu0 %vm308_vm14, %v324_v47 }
  0x37   : > { %562 = vmatpush.msk.msra.mxu0 %vm307_vm15, %v323_v49 }
  0x39   : > { %563 = vmatpush.msk.msra.mxu0 %vm306_vm0, %v322_v51 }
  0x3b   : > { %564 = vmatpush.msk.msra.mxu0 %vm305_vm1, %v321_v52 }
  0x3c   : > { %565 = vmatmul.msk.f32.vlgmr.msra.gmra.mxu0 %vm268_vm4, %v709_v53 }
  0x91   : > { %v411_v55 = vpop.xlane.xlu0 %410 }
  0x92   : > { %v412_v56 = vadd.f32 %v411_v55, %v409_v54 }
  0x94   : > { %414 = vst.msk [vmem:[%s255_s23] sm:$0xff] %vm262_vm2, %v412_v56 }
  0xb9   : > { %v403_v58 = vpop.f32.mrf.mxu0 }
  0xba   : > { %v406_v59 = vadd.f32 %v403_v58, %v385_v57 }
  0xbc   : > { %408 = vst.msk [vmem:[%s832_s11] sm:$0xff] %vm260_vm5, %v406_v59 }
  0xbd   : > { %655 = shalt.err (!%p652_p6)
}
  0xbe   : > { %570 = dma.vmem_to_hbm [thread:$0]  (%p770_p4), %s433_s27, 128, %s435_s4, %s416_s6  }
  0xbf PF: > { %p576_p7 = scmp.ge.s32.totalorder %s706_s17, 2  ;;  %s449_s5 = sand.u32 1, %s686_s12  }
  0xc0   : > { %s450_s11 = scalar_lea.sflag [#allocation3], %s449_s5 }
  0xc1   : > { %p573_p9 = pnand %p576_p7, %p777_p8 }
  0xc3   : > { %p574_p10 = pneg %p573_p9 }
  0xc5   : > { %681 = dma.done.wait (%p574_p10), %s450_s11, 128  }
  0xc6   : > { %683 = vsyncadd (%p574_p10), %s450_s11, 4294967168  ;;  %s17_s17 = sadd.s32 1, %s706_s17   ;;  %s921_s12 = smov %s690_s13 }
  0xc7   : > { %p14_p11 = scmp.ge.s32.totalorder %s17_s17, 4   ;;  %s922_s13 = smov %s694_s14 }
  0xc8   : > { %s923_s14 = smov %s783_s25  ;;  %s924_s15 = smov %s702_s16 }
  0xc9   : > { %s925_s16 = smov %s927_s20  ;;  %16 = sbr.rel (!%p14_p11) target bundleno = 4 (0x4), region = 82 }
  0xce   :  { %463 = vsyncpa [#allocation3], 1 }
  0xcf   :  { %465 = vsyncpa [#allocation3 + $0x1], 1 }

</bundles_post_ra>
